<compile_context>
chip_gen: v5e
topology: v5e:2x2
jax: 0.10.0
libtpu: 0.0.40
codegen_flags: <defaults>
</compile_context>

<pallas_src>
import jax
import jax.numpy as jnp
from jax.experimental import pallas as pl
from jax.experimental.pallas import tpu as pltpu

IN_FEATURES = 32
LANE = 128  # pad the output/weight dim to a full 128-lane tile


def _lin_relu_kernel(x_ref, wt_ref, b_ref, o_ref):
    # x_ref: [B, K], wt_ref: [K, N_pad] (pre-transposed at init), b_ref: [1, N_pad].
    acc = jnp.dot(x_ref[...], wt_ref[...], preferred_element_type=jnp.float32)
    acc = acc + b_ref[...]                      # broadcast (1, N_pad) over rows
    o_ref[...] = jnp.maximum(acc, 0.0).astype(o_ref.dtype)


def prepare_params(weight, bias):
    """One-time param prep (do this at init, not per call).

    weight: [O, 32] native nn.Linear layout; bias: [O].
    Returns (wt_pad [32, O_pad], b_pad [1, O_pad], O) with O_pad a multiple of 128.
    Padded columns are zero, so relu(0 + 0) = 0: they can never contaminate results.
    """
    O, K = weight.shape
    assert K == IN_FEATURES
    O_pad = max(LANE, ((O + LANE - 1) // LANE) * LANE)
    wt_pad = jnp.zeros((IN_FEATURES, O_pad), weight.dtype).at[:, :O].set(weight.T)
    b_pad = jnp.zeros((1, O_pad), bias.dtype).at[0, :O].set(bias)
    return wt_pad, b_pad, O


def _lin_relu_padded(x, wt_pad, b_pad):
    """Gridless single-block kernel: everything resident in VMEM, [B, N_pad] out."""
    B, K = x.shape
    N_pad = wt_pad.shape[1]
    vmem = pl.BlockSpec(memory_space=pltpu.MemorySpace.VMEM)
    return pl.pallas_call(
        _lin_relu_kernel,
        out_shape=jax.ShapeDtypeStruct((B, N_pad), x.dtype),
        in_specs=[vmem, vmem, vmem],
        out_specs=vmem,
        cost_estimate=pl.CostEstimate(
            flops=2 * B * K * N_pad,
            bytes_accessed=4 * (B * K + K * N_pad + N_pad + B * N_pad),
            transcendentals=0,
        ),
    )(x, wt_pad, b_pad)
    # TODO(synk): large-B path — add grid=(B//tB,), x/out BlockSpecs tiled on rows
    # with W/bias resident via index_map lambda i: (0, 0),
    # dimension_semantics=("parallel",) to engage v7x's 2 TCs; size tB for the
    # lane-padded footprint (x [tB,32] occupies tB*128*4 B in VMEM): keep
    # 2 bufs * tB * 2 * 128 * 4 B under ~24-28 MiB on v7x (32 MiB scoped of 64 MiB),
    # and set vmem_limit_bytes explicitly on v5e (16 MiB default scope); optionally
    # cast x/W to bf16 on v6e/v7x for the memory-bound large-B regime.


def cased_lin_relu(x, wt_pad, b_pad, out_features):
    """Single-case forward: relu(x @ W^T + b) -> [B, out_features]."""
    out_pad = _lin_relu_padded(x, wt_pad, b_pad)
    return out_pad[:, :out_features]


def cased_lin_relu_fused(x, prepared_cases):
    """All cases for the same x in ONE pallas_call (halves dispatch count).

    prepared_cases: list of (wt_pad, b_pad, O). Returns list of [B, O_i] outputs.
    """
    wt_all = jnp.concatenate([w for w, _, _ in prepared_cases], axis=1)
    b_all = jnp.concatenate([b for _, b, _ in prepared_cases], axis=1)
    out_all = _lin_relu_padded(x, wt_all, b_all)
    outs, off = [], 0
    for w, _, O in prepared_cases:
        outs.append(out_all[:, off:off + O])
        off += w.shape[1]
    return outs


def _init_params(key, out_features):
    # Deterministic init mimicking nn.Linear's uniform(-1/sqrt(fan_in), +).
    kw, kb = jax.random.split(key)
    bound = 1.0 / (IN_FEATURES ** 0.5)
    weight = jax.random.uniform(kw, (out_features, IN_FEATURES),
                                jnp.float32, -bound, bound)
    bias = jax.random.uniform(kb, (out_features,), jnp.float32, -bound, bound)
    return weight, bias


if __name__ == "__main__":
    key = jax.random.PRNGKey(0)
    kx, kp = jax.random.split(key)

    B = 8
    x = jax.random.normal(kx, (B, IN_FEATURES), jnp.float32)

    # Both tencheck cases: out_features = 10 and 20 (same padded kernel variant).
    raw_params = {}
    prepared = []
    for out_features in (10, 20):
        weight, bias = _init_params(jax.random.fold_in(kp, out_features),
                                    out_features)
        raw_params[out_features] = (weight, bias)
        prepared.append(prepare_params(weight, bias))

    # Per-case path (one compiled kernel serves both O=10 and O=20).
    for (wt_pad, b_pad, O) in prepared:
        out = cased_lin_relu(x, wt_pad, b_pad, O)
        out = jax.block_until_ready(out)
        weight, bias = raw_params[O]
        ref = jnp.maximum(x @ weight.T + bias, 0.0)
        assert out.shape == (B, O)
        assert jnp.allclose(out, ref, atol=1e-5, rtol=1e-5)

    # Fused path: both cases for the same x in a single pallas_call.
    fused_outs = cased_lin_relu_fused(x, prepared)
    fused_outs = jax.block_until_ready(fused_outs)
    for (wt_pad, b_pad, O), out in zip(prepared, fused_outs):
        weight, bias = raw_params[O]
        ref = jnp.maximum(x @ weight.T + bias, 0.0)
        assert out.shape == (B, O)
        assert jnp.allclose(out, ref, atol=1e-5, rtol=1e-5)

    print("KERNEL_OK")
</pallas_src>

<mosaic_0001>
module attributes {stable_mosaic.version = 11 : i64} {
  func.func @_lin_relu_kernel(%arg0: memref<8x32xf32, #tpu.memory_space<vmem>>, %arg1: memref<32x128xf32, #tpu.memory_space<vmem>>, %arg2: memref<1x128xf32, #tpu.memory_space<vmem>>, %arg3: memref<8x128xf32, #tpu.memory_space<vmem>>) attributes {dimension_semantics = [], scalar_prefetch = 0 : i64, scratch_operands = 0 : i64, tpu.core_type = #tpu.core_type<tc>} {
    %c0 = arith.constant 0 : index
    %c0_0 = arith.constant 0 : index
    %0 = vector.load %arg0[%c0, %c0_0] : memref<8x32xf32, #tpu.memory_space<vmem>>, vector<8x32xf32>
    %c0_1 = arith.constant 0 : index
    %c0_2 = arith.constant 0 : index
    %1 = vector.load %arg1[%c0_1, %c0_2] : memref<32x128xf32, #tpu.memory_space<vmem>>, vector<32x128xf32>
    %cst = arith.constant dense<0.000000e+00> : vector<8x128xf32>
    %2 = tpu.matmul %0, %1, %cst {dimension_numbers = #tpu.dot_dimension_numbers<[1], [0], [0], [1], [0, 0, 1, 1], [], []>} : vector<8x32xf32>, vector<32x128xf32>, vector<8x128xf32> -> vector<8x128xf32>
    %c0_3 = arith.constant 0 : index
    %c0_4 = arith.constant 0 : index
    %3 = vector.load %arg2[%c0_3, %c0_4] : memref<1x128xf32, #tpu.memory_space<vmem>>, vector<1x128xf32>
    %4 = vector.broadcast %3 : vector<1x128xf32> to vector<8x128xf32>
    %5 = arith.addf %2, %4 : vector<8x128xf32>
    %cst_5 = arith.constant 0.000000e+00 : f32
    %6 = vector.broadcast %cst_5 : f32 to vector<8x128xf32>
    %7 = arith.maximumf %5, %6 : vector<8x128xf32>
    %c0_6 = arith.constant 0 : index
    %c0_7 = arith.constant 0 : index
    %8 = vector.load %arg3[%c0_6, %c0_7] : memref<8x128xf32, #tpu.memory_space<vmem>>, vector<8x128xf32>
    tpu.vector_store %arg3[%c0_6, %c0_7], %7 {strides = array<i32>} : memref<8x128xf32, #tpu.memory_space<vmem>>, vector<8x128xf32>,
    return
  }
}

</mosaic_0001>

<bundles_post_ra>
// kernel: tpu_custom_call.1
= control target key start
LH: loop header
LB: loop body
LE: loop exit
PB: predicated region body
PF: predicated region fallthrough
CT: control target
= control target key end

     0   :  { %8 = vsyncpa [#allocation3], 0  ;;  %s220_s0 = inlined_call_operand.hbm [shape: f32[8,32], index: 0, kind: input, shape index: {}]   ;;  %s221_s1 = inlined_call_operand.hbm [shape: f32[32,128], index: 1, kind: input, shape index: {}]   ;;  %s222_s2 = inlined_call_operand.vmem [shape: f32[1,128], index: 2, kind: input, shape index: {}]   ;;  %s223_s3 = inlined_call_operand.hbm [shape: f32[8,128], index: 3, kind: output, shape index: {}]  }
   0x1   :  { %9 = vsyncpa [#allocation6], 0 }
   0x2   :  { %10 = vsyncpa [#allocation4], 0  ;;  %s16_s14 = sshll.u32 %s220_s0, 4  ;;  %s183_s15 = smov [#allocation2]   ;;  %s17_s14 = int_to_ptr.hbm [resolvable:$true] %s16_s14 }
   0x3   :  { %s18_s16 = sshll.u32 %s183_s15, 4  ;;  %s26_s19 = sshll.u32 %s221_s1, 4  ;;  %s19_s16 = int_to_ptr.vmem [resolvable:$true] %s18_s16  ;;  %s27_s19 = int_to_ptr.hbm [resolvable:$true] %s26_s19 }
   0x4   :  { %21 = dma.hbm_to_vmem [thread:$0]  %s17_s14, 128, %s19_s16, [#allocation3]  }
   0x5   :  { %s184_s20 = smov [#allocation5]   ;;  %s185_s22 = smov 128  }
   0x6   :  { %s28_s21 = sshll.u32 %s184_s20, 4  ;;  %s186_s23 = smov 8   ;;  %s29_s21 = int_to_ptr.vmem [resolvable:$true] %s28_s21 }
   0x7   :  { %34 = dma.hbm_to_vmem [thread:$0]  %s27_s19, 512, %s29_s21, [#allocation6], %s185_s22, %s185_s22, %s186_s23  }
   0x8   :  { %177 = dma.done.wait [#allocation3], 128  }
   0x9   :  { %178 = vsyncadd [#allocation3], 4294967168 }
   0xa   :  { %179 = dma.done.wait [#allocation6], 512  }
   0xb   :  { %180 = vsyncadd [#allocation6], 4294966784  ;;  %v49_v0 = vld [vmem:[#allocation5 + $0x18] sm:$0xff]  ;;  %v48_v1 = vld [vmem:[#allocation5 + $0x10] sm:$0xff]  ;;  %vm54_vm0 = vcmask 261120   ;;  %s187_s24 = smov [#allocation7]  }
   0xc   :  { %70 = vmatpush.msra.mxu0 %v49_v0  ;;  %v47_v2 = vld [vmem:[#allocation5 + $0x8] sm:$0xff]  ;;  %v46_v3 = vld [vmem:[#allocation5] sm:$0xff]  ;;  %v45_v4 = vld [vmem:[#allocation2] sm:$0xff]  ;;  %s85_s25 = sshll.u32 %s187_s24, 4  ;;  %s87_s28 = sshll.u32 %s223_s3, 4  ;;  %s86_s25 = int_to_ptr.vmem [resolvable:$true] %s85_s25  ;;  %s88_s28 = int_to_ptr.hbm [resolvable:$true] %s87_s28 }
   0xd   :  { %v104_v5 = vld [vmem:[%s222_s2] ss:$0 sm:$0xff] }
   0xe   :  { %71 = vmatpush.msra.mxu0 %v48_v1 }
  0x10   :  { %72 = vmatpush.msra.mxu0 %v47_v2 }
  0x12   :  { %73 = vmatpush.msra.mxu0 %v46_v3 }
  0x13   :  { %98 = vmatmul.msk.f32.vlgmr.msra.gmra.mxu0 %vm54_vm0, %v45_v4 }
  0x90   :  { %v75_v6 = vpop.f32.mrf.mxu0 }
  0x91   :  { %v76_v7 = vadd.f32 %v104_v5, %v75_v6 }
  0x93   :  { %v78_v8 = vmax.f32 %v76_v7, 0.0 }
  0x95   :  { %79 = vst [vmem:[#allocation7] sm:$0xff] %v78_v8 }
  0x96   :  { %90 = dma.vmem_to_hbm [thread:$0]  %s86_s25, 128, %s88_s28, [#allocation4]  }
  0x97   :  { %181 = dma.done.wait [#allocation4], 128  }
  0x98   :  { %182 = vsyncadd [#allocation4], 4294967168 }
  0x99   :  { %95 = vsyncpa [#allocation3], 1 }
  0x9a   :  { %96 = vsyncpa [#allocation6], 1 }
  0x9b   :  { %97 = vsyncpa [#allocation4], 1 }

</bundles_post_ra>
